<compile_context>
chip_gen: v7x
topology: tpu7x:2x2x1
jax: 0.10.0
libtpu: 0.0.40
codegen_flags: <defaults>
</compile_context>

<pallas_src>
import jax
import jax.numpy as jnp
from jax.experimental import pallas as pl
from jax.experimental.pallas import tpu as pltpu


def _attention_gather_kernel(hw_ref, w1b_ref, b1w_ref, w2b_ref,
                             expand_ref, sumv_ref, o_ref):
    hw = hw_ref[...]                                              # (nb, V*C) bf16

    # Linear1 + tanh for all V views in one lane-dense bf16 MXU pass (f32 acc).
    hid = jnp.tanh(
        jnp.dot(hw, w1b_ref[...], preferred_element_type=jnp.float32)
        + b1w_ref[...])                                           # (nb, V*C) f32

    # Linear2 -> one attention score per view.
    # (b2 is dropped: softmax is shift-invariant, so a scalar bias cancels.)
    sc = jnp.dot(hid.astype(w2b_ref.dtype), w2b_ref[...],
                 preferred_element_type=jnp.float32)              # (nb, V) f32

    # Softmax over the V views (f32).
    sc = sc - jnp.max(sc, axis=-1, keepdims=True)
    p = jnp.exp(sc)
    denom = jnp.sum(p, axis=-1, keepdims=True)
    p = p * pl.reciprocal(denom, approx=False)                    # (nb, V)

    # Broadcast each view's weight across its C lanes (0/1 matmul), weight the
    # inputs, and reduce over views (0/1 matmul).
    w_rep = jnp.dot(p.astype(expand_ref.dtype), expand_ref[...],
                    preferred_element_type=jnp.float32)           # (nb, V*C)
    weighted = (hw.astype(jnp.float32) * w_rep).astype(sumv_ref.dtype)
    gathered = jnp.dot(weighted, sumv_ref[...],
                       preferred_element_type=jnp.float32)        # (nb, C)
    o_ref[...] = gathered.astype(o_ref.dtype)


def prepare_attention_gather(params, num_views, compute_dtype=jnp.bfloat16):
    """Build the constant matrices once (hoisted out of the per-call path)."""
    V = num_views
    C = params["w1"].shape[0]
    assert params["w1"].shape == (C, C)
    assert params["w2"].shape == (1, C), "Linear2 must have out_features == 1"

    eye_v = jnp.eye(V, dtype=jnp.float32)
    w1_block = jnp.kron(eye_v, params["w1"].T.astype(jnp.float32)
                        ).astype(compute_dtype)                   # (V*C, V*C)
    b1_wide = jnp.tile(params["b1"].astype(jnp.float32), V
                       ).reshape(1, V * C)                        # (1, V*C) f32
    w2_block = jnp.kron(eye_v, params["w2"].astype(jnp.float32).reshape(C, 1)
                        ).astype(compute_dtype)                   # (V*C, V)
    expand = jnp.kron(eye_v, jnp.ones((1, C), jnp.float32)
                      ).astype(compute_dtype)                     # (V, V*C)
    sum_views = jnp.kron(jnp.ones((V, 1), jnp.float32), jnp.eye(C, dtype=jnp.float32)
                         ).astype(compute_dtype)                  # (V*C, C)

    return dict(V=V, C=C, compute_dtype=compute_dtype,
                w1_block=w1_block, b1_wide=b1_wide, w2_block=w2_block,
                expand=expand, sum_views=sum_views)


def attention_gather(h, prep):
    """h: (B, L, V, C) -> (B, L, C), using prepared constants `prep`."""
    B, L, V, C = h.shape
    assert V == prep["V"] and C == prep["C"]
    N = B * L
    VC = V * C
    out_dtype = h.dtype

    # (B, L, V, C) is contiguous in exactly this order -> free reshape.
    # bf16 halves the HBM read bytes of the dominant streamed operand.
    h_wide = h.reshape(N, VC).astype(prep["compute_dtype"])       # (N, V*C)

    # Grid/tile selection: one fat step at small N; 1024-row tiles at large N
    # (multiple of 16 -> valid bf16 (16,128) tiling; ragged last block is
    # padded/masked by Pallas and all math here is row-independent).
    if N <= 1024:
        nb, grid_n = N, 1
    else:
        nb = 1024
        grid_n = pl.cdiv(N, nb)

    itemsize = lambda a: a.size * a.dtype.itemsize
    flops = 2 * N * VC * (VC + 2 * V + C)
    bytes_accessed = (itemsize(h_wide)
                      + N * C * jnp.dtype(out_dtype).itemsize
                      + sum(itemsize(prep[k]) for k in
                            ("w1_block", "b1_wide", "w2_block",
                             "expand", "sum_views")))
    cost = pl.CostEstimate(flops=flops, transcendentals=N * (VC + V),
                           bytes_accessed=bytes_accessed)

    full = lambda i: (0, 0)
    out = pl.pallas_call(
        _attention_gather_kernel,
        out_shape=jax.ShapeDtypeStruct((N, C), out_dtype),
        grid_spec=pltpu.PrefetchScalarGridSpec(
            num_scalar_prefetch=0,
            grid=(grid_n,),
            in_specs=[
                pl.BlockSpec((nb, VC), lambda i: (i, 0)),   # h rows (bf16)
                pl.BlockSpec((VC, VC), full),               # block-diag W1^T
                pl.BlockSpec((1, VC), full),                # tiled b1 (f32)
                pl.BlockSpec((VC, V), full),                # block W2
                pl.BlockSpec((V, VC), full),                # 0/1 expansion
                pl.BlockSpec((VC, C), full),                # 0/1 view-sum
            ],
            out_specs=pl.BlockSpec((nb, C), lambda i: (i, 0)),
        ),
        compiler_params=pltpu.CompilerParams(
            dimension_semantics=("parallel",)),
        cost_estimate=cost,
    )(h_wide, prep["w1_block"], prep["b1_wide"], prep["w2_block"],
      prep["expand"], prep["sum_views"])

    return out.reshape(B, L, C)


def reference(h, params):
    """Pure-JAX f32 reference of the PyTorch forward (eval mode)."""
    B, L, V, C = h.shape
    hf = h.reshape(B * L, V, C)
    hidden = jnp.tanh(hf @ params["w1"].T + params["b1"])
    scores = (hidden @ params["w2"].T + params["b2"])[..., 0]     # (B*L, V)
    w = jax.nn.softmax(scores, axis=-1)
    out = jnp.einsum("bv,bvc->bc", w, hf)
    return out.reshape(B, L, C)


def make_params(key, d_model):
    """nn.Linear(d_model, d_model) + nn.Linear(d_model, 1) parameters."""
    ks = jax.random.split(key, 4)
    std = 0.1
    w1 = jax.random.normal(ks[0], (d_model, d_model), jnp.float32) * std
    b1 = jax.random.normal(ks[1], (d_model,), jnp.float32) * std
    w2 = jax.random.normal(ks[2], (1, d_model), jnp.float32) * std
    b2 = jax.random.normal(ks[3], (1,), jnp.float32) * std
    return dict(w1=w1, b1=b1, w2=w2, b2=b2)


if __name__ == "__main__":
    B, L, V, C = 2, 8, 4, 32      # d_model = 32, V*C = 128 (one full lane row)

    key = jax.random.PRNGKey(0)
    k_h, k_p = jax.random.split(key)
    h = jax.random.normal(k_h, (B, L, V, C), jnp.float32)
    params = make_params(k_p, C)

    prep = prepare_attention_gather(params, num_views=V)          # built once
    out = jax.block_until_ready(attention_gather(h, prep))
    ref = jax.block_until_ready(reference(h, params))

    assert out.shape == (B, L, C), out.shape
    err = float(jnp.max(jnp.abs(out - ref)))
    # bf16 MXU operands -> loosened tolerance vs the f32 reference.
    assert jnp.allclose(out, ref, atol=5e-2, rtol=5e-2), err

    print("KERNEL_OK")
</pallas_src>

<mosaic_0001>
module attributes {stable_mosaic.version = 11 : i64} {
  func.func @_attention_gather_kernel(%arg0: i32, %arg1: memref<16x128xbf16, #tpu.memory_space<vmem>>, %arg2: memref<128x128xbf16, #tpu.memory_space<vmem>>, %arg3: memref<1x128xf32, #tpu.memory_space<vmem>>, %arg4: memref<128x4xbf16, #tpu.memory_space<vmem>>, %arg5: memref<4x128xbf16, #tpu.memory_space<vmem>>, %arg6: memref<128x32xbf16, #tpu.memory_space<vmem>>, %arg7: memref<16x32xf32, #tpu.memory_space<vmem>>) attributes {dimension_semantics = [#tpu.dimension_semantics<parallel>], iteration_bounds = array<i64: 1>, scalar_prefetch = 0 : i64, scratch_operands = 0 : i64, tpu.core_type = #tpu.core_type<tc>, window_params = [{transform_indices = @transform_0, window_bounds = array<i64: 16, 128>}, {pipeline_mode = #tpu.pipeline_mode<synchronous>, transform_indices = @transform_1, window_bounds = array<i64: 128, 128>}, {pipeline_mode = #tpu.pipeline_mode<synchronous>, transform_indices = @transform_2, window_bounds = array<i64: 1, 128>}, {pipeline_mode = #tpu.pipeline_mode<synchronous>, transform_indices = @transform_3, window_bounds = array<i64: 128, 4>}, {pipeline_mode = #tpu.pipeline_mode<synchronous>, transform_indices = @transform_4, window_bounds = array<i64: 4, 128>}, {pipeline_mode = #tpu.pipeline_mode<synchronous>, transform_indices = @transform_5, window_bounds = array<i64: 128, 32>}, {transform_indices = @transform_6, window_bounds = array<i64: 16, 32>}]} {
    %c0 = arith.constant 0 : index
    %c0_0 = arith.constant 0 : index
    %0 = vector.load %arg1[%c0, %c0_0] : memref<16x128xbf16, #tpu.memory_space<vmem>>, vector<16x128xbf16>
    %c0_1 = arith.constant 0 : index
    %c0_2 = arith.constant 0 : index
    %1 = vector.load %arg2[%c0_1, %c0_2] : memref<128x128xbf16, #tpu.memory_space<vmem>>, vector<128x128xbf16>
    %cst = arith.constant dense<0.000000e+00> : vector<16x128xf32>
    %2 = tpu.matmul %0, %1, %cst {dimension_numbers = #tpu.dot_dimension_numbers<[1], [0], [0], [1], [0, 0, 1, 1], [], []>} : vector<16x128xbf16>, vector<128x128xbf16>, vector<16x128xf32> -> vector<16x128xf32>
    %c0_3 = arith.constant 0 : index
    %c0_4 = arith.constant 0 : index
    %3 = vector.load %arg3[%c0_3, %c0_4] : memref<1x128xf32, #tpu.memory_space<vmem>>, vector<1x128xf32>
    %4 = vector.broadcast %3 : vector<1x128xf32> to vector<16x128xf32>
    %5 = arith.addf %2, %4 : vector<16x128xf32>
    %6 = math.tanh %5 : vector<16x128xf32>
    %7 = arith.truncf %6 : vector<16x128xf32> to vector<16x128xbf16>
    %c0_5 = arith.constant 0 : index
    %c0_6 = arith.constant 0 : index
    %8 = vector.load %arg4[%c0_5, %c0_6] : memref<128x4xbf16, #tpu.memory_space<vmem>>, vector<128x4xbf16>
    %cst_7 = arith.constant dense<0.000000e+00> : vector<16x4xf32>
    %9 = tpu.matmul %7, %8, %cst_7 {dimension_numbers = #tpu.dot_dimension_numbers<[1], [0], [0], [1], [0, 0, 1, 1], [], []>} : vector<16x128xbf16>, vector<128x4xbf16>, vector<16x4xf32> -> vector<16x4xf32>
    %cst_8 = arith.constant dense<0xFF800000> : vector<16xf32>
    %10 = vector.multi_reduction <maximumf>, %9, %cst_8 [1] : vector<16x4xf32> to vector<16xf32>
    %11 = vector.shape_cast %10 : vector<16xf32> to vector<16x1xf32>
    %12 = vector.broadcast %11 : vector<16x1xf32> to vector<16x4xf32>
    %13 = arith.subf %9, %12 : vector<16x4xf32>
    %14 = math.exp %13 : vector<16x4xf32>
    %cst_9 = arith.constant dense<0.000000e+00> : vector<16xf32>
    %15 = vector.multi_reduction <add>, %14, %cst_9 [1] : vector<16x4xf32> to vector<16xf32>
    %16 = vector.shape_cast %15 : vector<16xf32> to vector<16x1xf32>
    %17 = tpu.reciprocal %16 : vector<16x1xf32> -> vector<16x1xf32>
    %18 = vector.broadcast %17 : vector<16x1xf32> to vector<16x4xf32>
    %19 = arith.mulf %14, %18 : vector<16x4xf32>
    %20 = arith.truncf %19 : vector<16x4xf32> to vector<16x4xbf16>
    %c0_10 = arith.constant 0 : index
    %c0_11 = arith.constant 0 : index
    %21 = vector.load %arg5[%c0_10, %c0_11] : memref<4x128xbf16, #tpu.memory_space<vmem>>, vector<4x128xbf16>
    %cst_12 = arith.constant dense<0.000000e+00> : vector<16x128xf32>
    %22 = tpu.matmul %20, %21, %cst_12 {dimension_numbers = #tpu.dot_dimension_numbers<[1], [0], [0], [1], [0, 0, 1, 1], [], []>} : vector<16x4xbf16>, vector<4x128xbf16>, vector<16x128xf32> -> vector<16x128xf32>
    %23 = arith.extf %0 : vector<16x128xbf16> to vector<16x128xf32>
    %24 = arith.mulf %23, %22 : vector<16x128xf32>
    %25 = arith.truncf %24 : vector<16x128xf32> to vector<16x128xbf16>
    %c0_13 = arith.constant 0 : index
    %c0_14 = arith.constant 0 : index
    %26 = vector.load %arg6[%c0_13, %c0_14] : memref<128x32xbf16, #tpu.memory_space<vmem>>, vector<128x32xbf16>
    %cst_15 = arith.constant dense<0.000000e+00> : vector<16x32xf32>
    %27 = tpu.matmul %25, %26, %cst_15 {dimension_numbers = #tpu.dot_dimension_numbers<[1], [0], [0], [1], [0, 0, 1, 1], [], []>} : vector<16x128xbf16>, vector<128x32xbf16>, vector<16x32xf32> -> vector<16x32xf32>
    %c0_16 = arith.constant 0 : index
    %c0_17 = arith.constant 0 : index
    %28 = vector.load %arg7[%c0_16, %c0_17] : memref<16x32xf32, #tpu.memory_space<vmem>>, vector<16x32xf32>
    tpu.vector_store %arg7[%c0_16, %c0_17], %27 {strides = array<i32>} : memref<16x32xf32, #tpu.memory_space<vmem>>, vector<16x32xf32>,
    return
  }
  func.func @transform_0(%arg0: i32) -> (i32, i32) {
    %c0_i32 = arith.constant 0 : i32
    %c0_i32_0 = arith.constant 0 : i32
    return %arg0, %c0_i32 : i32, i32
  }
  func.func @transform_1(%arg0: i32) -> (i32, i32) {
    %c0_i32 = arith.constant 0 : i32
    %c0_i32_0 = arith.constant 0 : i32
    %c0_i32_1 = arith.constant 0 : i32
    return %c0_i32, %c0_i32_0 : i32, i32
  }
  func.func @transform_2(%arg0: i32) -> (i32, i32) {
    %c0_i32 = arith.constant 0 : i32
    %c0_i32_0 = arith.constant 0 : i32
    %c0_i32_1 = arith.constant 0 : i32
    return %c0_i32, %c0_i32_0 : i32, i32
  }
  func.func @transform_3(%arg0: i32) -> (i32, i32) {
    %c0_i32 = arith.constant 0 : i32
    %c0_i32_0 = arith.constant 0 : i32
    %c0_i32_1 = arith.constant 0 : i32
    return %c0_i32, %c0_i32_0 : i32, i32
  }
  func.func @transform_4(%arg0: i32) -> (i32, i32) {
    %c0_i32 = arith.constant 0 : i32
    %c0_i32_0 = arith.constant 0 : i32
    %c0_i32_1 = arith.constant 0 : i32
    return %c0_i32, %c0_i32_0 : i32, i32
  }
  func.func @transform_5(%arg0: i32) -> (i32, i32) {
    %c0_i32 = arith.constant 0 : i32
    %c0_i32_0 = arith.constant 0 : i32
    %c0_i32_1 = arith.constant 0 : i32
    return %c0_i32, %c0_i32_0 : i32, i32
  }
  func.func @transform_6(%arg0: i32) -> (i32, i32) {
    %c0_i32 = arith.constant 0 : i32
    %c0_i32_0 = arith.constant 0 : i32
    return %arg0, %c0_i32 : i32, i32
  }
}

</mosaic_0001>

<bundles_post_ra>
// kernel: tpu_custom_call.1
= control target key start
LH: loop header
LB: loop body
LE: loop exit
PB: predicated region body
PF: predicated region fallthrough
CT: control target
= control target key end

     0   :  { %v644_v1 = vmov 0.0   ;;  %vm645_vm0 = vmmov 0   ;;  %s820_s0 = inlined_call_operand.vmem [shape: bf16[16,128], index: 0, kind: input, shape index: {}]   ;;  %s821_s1 = inlined_call_operand.vmem [shape: bf16[128,128], index: 1, kind: input, shape index: {}]   ;;  %s822_s2 = inlined_call_operand.vmem [shape: f32[1,128], index: 2, kind: input, shape index: {}]   ;;  %s823_s3 = inlined_call_operand.vmem [shape: bf16[128,4], index: 3, kind: input, shape index: {}]   ;;  %s824_s4 = inlined_call_operand.vmem [shape: bf16[4,128], index: 4, kind: input, shape index: {}]   ;;  %s825_s5 = inlined_call_operand.vmem [shape: bf16[128,32], index: 5, kind: input, shape index: {}]   ;;  %s826_s6 = inlined_call_operand.hbm [shape: f32[16,32], index: 6, kind: output, shape index: {}]  }
   0x1   :  { %v582_v0 = vld [vmem:[%s821_s1] sm:$0xff]   ;;  %511 = vmatprep.subr.bf16.mxu0 %v644_v1  ;;  %531 = vmatprep.subr.bf16.mxu1 %v644_v1  ;;  %v583_v2 = vld [vmem:[%s821_s1 + $0x8] sm:$0xff]   ;;  %v584_v3 = vld [vmem:[%s821_s1 + $0x10] sm:$0xff]  }
   0x2   :  { %512 = vmatpush3.bf16.msra.mxu0 %v582_v0  ;;  %527 = vmatprep.mubr.msk.bf16.mxu0 %vm645_vm0, %v644_v1  ;;  %v591_v4 = vld [vmem:[%s823_s3] sm:$0xff]   ;;  %v585_v5 = vld [vmem:[%s821_s1 + $0x18] sm:$0xff]   ;;  %v592_v6 = vld [vmem:[%s823_s3 + $0x8] sm:$0xff]  }
   0x3   :  { %513 = vmatprep.subr.bf16.mxu0 %v644_v1  ;;  %547 = vmatprep.mubr.msk.bf16.mxu1 %vm645_vm0, %v644_v1  ;;  %v586_v7 = vld [vmem:[%s821_s1 + $0x20] sm:$0xff]   ;;  %v593_v8 = vld [vmem:[%s823_s3 + $0x10] sm:$0xff]   ;;  %v587_v9 = vld [vmem:[%s821_s1 + $0x28] sm:$0xff]  }
   0x4   :  { %532 = vmatpush3.bf16.msra.mxu1 %v591_v4  ;;  %v594_v10 = vld [vmem:[%s823_s3 + $0x18] sm:$0xff]  }
   0x5   :  { %533 = vmatprep.subr.bf16.mxu1 %v644_v1 }
   0x6   :  { %514 = vmatpush3.bf16.msra.mxu0 %v583_v2 }
   0x7   :  { %515 = vmatprep.subr.bf16.mxu0 %v644_v1 }
   0x8   :  { %534 = vmatpush3.bf16.msra.mxu1 %v592_v6 }
   0x9   :  { %535 = vmatprep.subr.bf16.mxu1 %v644_v1 }
   0xa   :  { %516 = vmatpush3.bf16.msra.mxu0 %v584_v3 }
   0xb   :  { %517 = vmatprep.subr.bf16.mxu0 %v644_v1 }
   0xc   :  { %536 = vmatpush3.bf16.msra.mxu1 %v593_v8 }
   0xd   :  { %537 = vmatprep.subr.bf16.mxu1 %v644_v1 }
   0xe   :  { %518 = vmatpush3.bf16.msra.mxu0 %v585_v5 }
   0xf   :  { %519 = vmatprep.subr.bf16.mxu0 %v644_v1 }
  0x12   :  { %520 = vmatpush3.bf16.msra.mxu0 %v586_v7 }
  0x13   :  { %521 = vmatprep.subr.bf16.mxu0 %v644_v1 }
  0x14   :  { %11 = vsyncpa [#allocation3], 0  ;;  %v588_v11 = vld [vmem:[%s821_s1 + $0x30] sm:$0xff]   ;;  %538 = vmatpush3.bf16.msra.mxu1 %v594_v10  ;;  %v589_v12 = vld [vmem:[%s821_s1 + $0x38] sm:$0xff]   ;;  %vm253_vm1 = vcmask 31744   ;;  %vm281_vm2 = vcmask 1041408  }
  0x15   :  { %539 = vmatprep.subr.bf16.mxu1 %v644_v1  ;;  %v739_v13 = vld [vmem:[%s820_s0] sm:$0xff]   ;;  %v596_v15 = vld [vmem:[%s823_s3 + $0x28] sm:$0xff]   ;;  %v597_v16 = vld [vmem:[%s823_s3 + $0x30] sm:$0xff]   ;;  %s646_s22 = smov [#allocation2]   ;;  %vm436_vm3 = vcmask 261120  }
  0x16   :  { %522 = vmatpush3.bf16.msra.mxu0 %v587_v9  ;;  %v595_v14 = vld [vmem:[%s823_s3 + $0x20] sm:$0xff]   ;;  %v598_v17 = vld [vmem:[%s823_s3 + $0x38] sm:$0xff]   ;;  %v600_v47 = vld [vmem:[%s825_s5 + $0x8] sm:$0xff]   ;;  %v326_v61 = vunpack.c.l.bf16 %v739_v13  ;;  %v327_v62 = vunpack.c.h.bf16 %v739_v13  ;;  %s444_s23 = sshll.u32 %s646_s22, 4  ;;  %s445_s23 = int_to_ptr.vmem [resolvable:$true] %s444_s23 }
  0x17   :  { %523 = vmatprep.subr.bf16.mxu0 %v644_v1  ;;  %v455_v18 = vld [vmem:[%s822_s2] ss:$0 sm:$0xff]  ;;  %v601_v48 = vld [vmem:[%s825_s5 + $0x10] sm:$0xff]   ;;  %v602_v49 = vld [vmem:[%s825_s5 + $0x18] sm:$0xff]   ;;  %p625_p1 = scmp.lt.s32.totalorder %s445_s23, %s445_s23 }
  0x18   :  { %540 = vmatpush3.bf16.msra.mxu1 %v595_v14  ;;  %v277_v44 = vld [vmem:[%s824_s4] sm:$0x3]  ;;  %v604_v51 = vld [vmem:[%s825_s5 + $0x28] sm:$0xff]   ;;  %v605_v59 = vld [vmem:[%s825_s5 + $0x30] sm:$0xff]  }
  0x19   :  { %541 = vmatprep.subr.bf16.mxu1 %v644_v1  ;;  %v283_v45 = vsel %vm281_vm2, %v277_v44, 0  ;;  %v599_v46 = vld [vmem:[%s825_s5] sm:$0xff]   ;;  %v606_v60 = vld [vmem:[%s825_s5 + $0x38] sm:$0xff]  }
  0x1a   :  { %524 = vmatpush3.bf16.msra.mxu0 %v588_v11  ;;  %v603_v50 = vld [vmem:[%s825_s5 + $0x20] sm:$0xff]   ;;  %s620_s5 = scalar_lea.vmem %s445_s23, 256 }
  0x1b   :  { %525 = vmatprep.subr.bf16.mxu0 %v644_v1  ;;  %p621_p0 = scmp.ne.s32.totalorder %s445_s23, %s620_s5  ;;  %p626_p2 = scmp.lt.s32.totalorder %s620_s5, %s620_s5 }
  0x1c   :  { %542 = vmatpush3.bf16.msra.mxu1 %v596_v15 }
  0x1d   :  { %543 = vmatprep.subr.bf16.mxu1 %v644_v1  ;;  %p627_p3 = por %p626_p2, %p625_p1 }
  0x1e   :  { %526 = vmatpush3.bf16.msra.mxu0 %v589_v12 }
  0x1f   :  { %551 = vmatprep.subr.bf16.mxu0 %v644_v1  ;;  %p628_p4 = pnand %p627_p3, %p621_p0 }
  0x20   :  { %544 = vmatpush3.bf16.msra.mxu1 %v597_v16 }
  0x21   :  { %528 = vmatmul.mubr.bf16.vlgmr.msra.gmra.mrb[0].mxu0 %v739_v13  ;;  %545 = vmatprep.subr.bf16.mxu1 %v644_v1 }
  0x22   :  { %553 = vmatprep.mubr.msk.bf16.mxu0 %vm645_vm0, %v644_v1  ;;  %552 = vmatpush3.bf16.msra.mxu0 %v283_v45 }
  0x24   :  { %546 = vmatpush3.bf16.msra.mxu1 %v598_v17 }
  0x25   :  { %557 = vmatprep.subr.bf16.mxu1 %v644_v1 }
  0xf4   :  { %v138_v19 = vpop.f32.mrb[0].mxu0 }
  0xf5   :  { %v139_v20 = vadd.f32 %v455_v18, %v138_v19  ;;  %v529_v21 = vpop.f32.mrb[1].mxu0 }
  0xf6   :  { %v141_v22 = vpop.f32.mrb[2].mxu0 }
  0xf7   :  { %v142_v23 = vadd.f32 %v455_v18, %v141_v22  ;;  %v530_v24 = vpop.f32.mrb[3].mxu0  ;;  %608 = vtanh.f32 %v139_v20 }
  0xf9   :  { %610 = vtanh.f32 %v142_v23 }
 0x101   :  { %v609_v25 = vpop.eup %608 }
 0x103   :  { %v611_v26 = vpop.eup %610 }
 0x104   :  { %v147_v27 = vpack.c.bf16 %v611_v26, %v609_v25 }
 0x106   :  { %548 = vmatmul.mubr.bf16.vlgmr.msra.gmra.mrb[0].mxu1 %v147_v27 }
 0x107   :  { %573 = vmatprep.mubr.msk.bf16.mxu1 %vm645_vm0, %v644_v1  ;;  %558 = vmatpush3.bf16.msra.mxu1 %v599_v46 }
 0x108   :  { %559 = vmatprep.subr.bf16.mxu1 %v644_v1 }
 0x10b   :  { %560 = vmatpush3.bf16.msra.mxu1 %v600_v47 }
 0x10c   :  { %561 = vmatprep.subr.bf16.mxu1 %v644_v1 }
 0x10f   :  { %562 = vmatpush3.bf16.msra.mxu1 %v601_v48 }
 0x110   :  { %563 = vmatprep.subr.bf16.mxu1 %v644_v1 }
 0x113   :  { %564 = vmatpush3.bf16.msra.mxu1 %v602_v49 }
 0x114   :  { %565 = vmatprep.subr.bf16.mxu1 %v644_v1 }
 0x117   :  { %566 = vmatpush3.bf16.msra.mxu1 %v603_v50 }
 0x118   :  { %567 = vmatprep.subr.bf16.mxu1 %v644_v1 }
 0x11b   :  { %568 = vmatpush3.bf16.msra.mxu1 %v604_v51 }
 0x11c   :  { %569 = vmatprep.subr.bf16.mxu1 %v644_v1 }
 0x11f   :  { %570 = vmatpush3.bf16.msra.mxu1 %v605_v59 }
 0x120   :  { %571 = vmatprep.subr.bf16.mxu1 %v644_v1 }
 0x123   :  { %572 = vmatpush3.bf16.msra.mxu1 %v606_v60 }
 0x1d9   :  { %v246_v28 = vpop.f32.mrb[0].mxu1 }
 0x1da   :  { %v549_v29 = vpop.f32.mrb[1].mxu1  ;;  %v254_v30 = vsel %vm253_vm1, %v246_v28, -inf }
 0x1db   :  { %255 = vmax.xlane.f32.xlu0 %v254_v30  ;;  %v249_v31 = vpop.f32.mrb[2].mxu1 }
 0x1dc   :  { %v550_v32 = vpop.f32.mrb[3].mxu1  ;;  %v257_v33 = vsel %vm253_vm1, %v249_v31, -inf }
 0x1df   :  { %258 = vmax.xlane.f32.xlu0 %v257_v33 }
 0x268   :  { %v256_v34 = vpop.xlane.xlu0 %255 }
 0x269   :  { %v260_v35 = vsub.f32 %v246_v28, %v256_v34 }
 0x26b   :  { %v262_v36 = vmul.f32 1.442695, %v260_v35 }
 0x26c   :  { %v259_v37 = vpop.xlane.xlu0 %258 }
 0x26d   :  { %612 = vpow2.f32 %v262_v36  ;;  %v261_v38 = vsub.f32 %v249_v31, %v259_v37 }
 0x26f   :  { %v264_v39 = vmul.f32 1.442695, %v261_v38 }
 0x271   :  { %614 = vpow2.f32 %v264_v39 }
 0x277   :  { %v613_v40 = vpop.eup %612 }
 0x278   :  { %v266_v41 = vsel %vm253_vm1, %v613_v40, 0.0 }
 0x279   :  { %267 = vadd.xlane.f32.xlu1 %v266_v41 }
 0x27b   :  { %v615_v42 = vpop.eup %614 }
 0x27c   :  { %v269_v43 = vsel %vm253_vm1, %v615_v42, 0.0 }
 0x27d   :  { %270 = vadd.xlane.f32.xlu1 %v269_v43 }
 0x306   :  { %v268_v52 = vpop.xlane.xlu1 %267 }
 0x307   :  { %616 = vrcp.f32 %v268_v52 }
 0x30a   :  { %v271_v53 = vpop.xlane.xlu1 %270 }
 0x30b   :  { %618 = vrcp.f32 %v271_v53 }
 0x311   :  { %v617_v54 = vpop.eup %616 }
 0x312   :  { %v274_v56 = vmul.f32 %v617_v54, %v613_v40 }
 0x315   :  { %v619_v55 = vpop.eup %618 }
 0x316   :  { %v275_v57 = vmul.f32 %v619_v55, %v615_v42 }
 0x318   :  { %v276_v58 = vpack.c.bf16 %v275_v57, %v274_v56 }
 0x31a   :  { %554 = vmatmul.mubr.msk.bf16.vlgmr.msra.gmra.mrb[4].mxu0 %vm253_vm1, %v276_v58 }
 0x3ed   :  { %v319_v63 = vpop.f32.mrb[4].mxu0 }
 0x3ee   :  { %v555_v0 = vpop.f32.mrb[5].mxu0  ;;  %v328_v3 = vmul.f32 %v326_v61, %v319_v63 }
 0x3ef   :  { %v322_v2 = vpop.f32.mrb[6].mxu0 }
 0x3f0   :  { %v329_v4 = vmul.f32 %v327_v62, %v322_v2  ;;  %v556_v5 = vpop.f32.mrb[7].mxu0 }
 0x3f2   :  { %v330_v6 = vpack.c.bf16 %v329_v4, %v328_v3 }
 0x3f4   :  { %574 = vmatmul.mubr.bf16.vlgmr.msra.gmra.mrb[4].mxu1 %v330_v6 }
 0x4c7   :  { %v429_v1 = vpop.f32.mrb[4].mxu1 }
 0x4c8   :  { %437 = vst.msk [vmem:[#allocation2] sm:$0xff] %vm436_vm3, %v429_v1  ;;  %v575_v7 = vpop.f32.mrb[5].mxu1 }
 0x4c9   :  { %v432_v8 = vpop.f32.mrb[6].mxu1 }
 0x4ca   :  { %438 = vst.msk [vmem:[#allocation2 + $0x8] sm:$0xff] %vm436_vm3, %v432_v8  ;;  %v576_v9 = vpop.f32.mrb[7].mxu1 }
 0x4cb   :  { %631 = shalt.err (!%p628_p4)
}
 0x4cc   :  { %s632_s0 = scalar_lea.hbm %s826_s6, 256 }
 0x4cd   :  { %p633_p5 = scmp.ne.s32.totalorder %s826_s6, %s632_s0  ;;  %p636_p6 = scmp.lt.u32.totalorder %s632_s0, %s826_s6 }
 0x4cf   :  { %p638_p7 = pnand %p636_p6, %p633_p5 }
 0x4d1   :  { %641 = shalt.err (!%p638_p7)
}
 0x4d2   :  { %s647_s29 = smov 128   ;;  %s648_s30 = smov 8  }
 0x4d3   :  { %450 = dma.vmem_to_hbm [thread:$0]  %s445_s23, 256, %s826_s6, [#allocation3], %s647_s29, %s647_s29, %s648_s30  }
 0x4d4   :  { %642 = dma.done.wait [#allocation3], 256  }
 0x4d5   :  { %643 = vsyncadd [#allocation3], 4294967040 }
 0x4d6   :  { %454 = vsyncpa [#allocation3], 1 }

</bundles_post_ra>
